<compile_context>
chip_gen: v6e
topology: v6e:2x2x1
jax: 0.10.0
libtpu: 0.0.40
codegen_flags: <defaults>
</compile_context>

<pallas_src>
import jax
import jax.numpy as jnp
from jax.experimental import pallas as pl
from jax.experimental.pallas import tpu as pltpu


def _object_model_kernel(x_ref, kb_ref, w_ref, out_ref):
    """Collapsed two-branch head on one [TILE_S, H] activation tile.

    x_ref  : [TILE_S, H]        streamed activation tile (one batch element)
    kb_ref : [1, 2*d_out]       per-batch seq-invariant bias (k-path + biases)
    w_ref  : [H, 2*d_out]       collapsed weights [W11_top@W12 | W21_top@W22]
    out_ref: [TILE_S, 2*d_out]  packed [po1 | po2]
    """
    out_ref[...] = (
        jnp.dot(x_ref[...], w_ref[...], preferred_element_type=jnp.float32)
        + kb_ref[...]
    ).astype(out_ref.dtype)


def init_params(key, hidden_size, num_classes):
    """PyTorch-Linear-style init (uniform +-1/sqrt(fan_in)).

    Weights stored as (in_features, out_features) so y = x @ W + b.
    """
    d_in = hidden_size * 3
    d_hid = hidden_size * 3 // 2
    d_out = num_classes + 1
    keys = jax.random.split(key, 8)

    def lin(kw, kb, fan_in, fan_out):
        bound = 1.0 / float(fan_in) ** 0.5
        w = jax.random.uniform(kw, (fan_in, fan_out), jnp.float32, -bound, bound)
        b = jax.random.uniform(kb, (1, fan_out), jnp.float32, -bound, bound)
        return w, b

    w11, b11 = lin(keys[0], keys[1], d_in, d_hid)
    w12, b12 = lin(keys[2], keys[3], d_hid, d_out)
    w21, b21 = lin(keys[4], keys[5], d_in, d_hid)
    w22, b22 = lin(keys[6], keys[7], d_hid, d_out)
    return (w11, b11, w12, b12, w21, b21, w22, b22)


def object_model_forward(x_b, k1, k2, params, *, tile_s=512):
    """JAX/Pallas equivalent of ObjectModel.forward.

    x_b   : [B, S, H] hidden states (f32 or bf16)
    k1,k2 : [B] int32 token indices (one per batch element, as implied by
            gather() + cat(dim=1) + unsqueeze(1).expand in the reference).
    returns (po1, po2), each [B, S, num_classes + 1], float32.
    """
    B, S, H = x_b.shape
    (w11, b11, w12, b12, w21, b21, w22, b22) = params
    d_out = w12.shape[1]

    # ---- Seq-invariant per-batch precompute (tiny matmuls, done in f32) ----
    # gather(indexs, mat) == stack_i mat[i][indexs[i]]  -> [B, H]
    k1g = x_b[jnp.arange(B), k1].astype(jnp.float32)
    k2g = x_b[jnp.arange(B), k2].astype(jnp.float32)
    k = jnp.concatenate([k1g, k2g], axis=1)                          # [B, 2H]

    # Fold the k-path and all biases through the second layer (no activation
    # between the two Linears, so this is exact).
    kb1 = (k @ w11[H:, :] + b11) @ w12 + b12                         # [B, d_out]
    kb2 = (k @ w21[H:, :] + b21) @ w22 + b22                         # [B, d_out]
    kb = jnp.concatenate([kb1, kb2], axis=1)[:, None, :]             # [B,1,2*d_out]
    kb = kb.astype(jnp.float32)

    # Collapse both branches' layers: W_eff = [W11_top@W12 | W21_top@W22].
    w_eff = jnp.concatenate([w11[:H, :] @ w12, w21[:H, :] @ w22], axis=1)
    w_eff = w_eff.astype(x_b.dtype)                                  # [H, 2*d_out]

    # ---- Row tiling within a batch element ---------------------------------
    if tile_s >= S:
        tile_s = S
    else:
        tile_s = max(8, (tile_s // 8) * 8)   # keep (8,128) sublane constraint
        tile_s = min(tile_s, S)
    grid = (B, pl.cdiv(S, tile_s))

    x_spec = pl.BlockSpec((None, tile_s, H), lambda b, s: (b, s, 0))
    kb_spec = pl.BlockSpec((None, 1, 2 * d_out), lambda b, s: (b, 0, 0))
    w_spec = pl.BlockSpec((H, 2 * d_out), lambda b, s: (0, 0))       # resident
    out_spec = pl.BlockSpec((None, tile_s, 2 * d_out), lambda b, s: (b, s, 0))

    x_bytes = x_b.dtype.itemsize
    w_bytes = w_eff.dtype.itemsize

    # VMEM footprint: double-buffered x / out tiles + resident weight + kb.
    vmem_need = (
        2 * tile_s * H * x_bytes
        + 2 * tile_s * 2 * d_out * 4
        + 2 * H * 2 * d_out * w_bytes
        + 2 * 2 * d_out * 4
    )
    vmem_limit = int(min(max(2 * vmem_need, 4 << 20), 48 << 20))

    flops = 2 * B * S * H * (2 * d_out)
    bytes_accessed = (
        B * S * H * x_bytes            # streamed activations
        + B * S * 2 * d_out * 4        # packed output
        + H * 2 * d_out * w_bytes      # collapsed weights
        + B * 2 * d_out * 4            # kb
    )

    po = pl.pallas_call(
        _object_model_kernel,
        out_shape=jax.ShapeDtypeStruct((B, S, 2 * d_out), jnp.float32),
        grid=grid,
        in_specs=[x_spec, kb_spec, w_spec],
        out_specs=out_spec,
        compiler_params=pltpu.CompilerParams(
            dimension_semantics=("parallel", "parallel"),
            vmem_limit_bytes=vmem_limit,
        ),
        cost_estimate=pl.CostEstimate(
            flops=flops, transcendentals=0, bytes_accessed=bytes_accessed
        ),
    )(x_b, kb, w_eff)

    return po[..., :d_out], po[..., d_out:]


def _reference_forward(x_b, k1, k2, params):
    """Pure-JAX reference mirroring the PyTorch module exactly."""
    B, S, H = x_b.shape
    x = x_b.astype(jnp.float32)
    k1g = x[jnp.arange(B), k1]
    k2g = x[jnp.arange(B), k2]
    k = jnp.concatenate([k1g, k2g], axis=1)
    h = jnp.concatenate(
        [x, jnp.broadcast_to(k[:, None, :], (B, S, 2 * H))], axis=2)
    (w11, b11, w12, b12, w21, b21, w22, b22) = params
    x_l1 = h @ w11 + b11[0]
    x_l2 = h @ w21 + b21[0]
    return x_l1 @ w12 + b12[0], x_l2 @ w22 + b22[0]


if __name__ == "__main__":
    # Small shapes consistent with the forward pass.
    B, S, H = 2, 16, 32         # batch, seq, hidden
    num_classes = 7             # -> num_classes + 1 = 8 output logits

    key = jax.random.PRNGKey(0)
    k_params, k_x, k_i1, k_i2 = jax.random.split(key, 4)

    params = init_params(k_params, H, num_classes)
    x_b = jax.random.normal(k_x, (B, S, H), jnp.float32)
    k1 = jax.random.randint(k_i1, (B,), 0, S, jnp.int32)
    k2 = jax.random.randint(k_i2, (B,), 0, S, jnp.int32)

    # tile_s=8 so the small test also exercises a multi-tile seq grid.
    po1, po2 = object_model_forward(x_b, k1, k2, params, tile_s=8)
    jax.block_until_ready((po1, po2))

    ref1, ref2 = _reference_forward(x_b, k1, k2, params)
    assert po1.shape == (B, S, num_classes + 1)
    assert po2.shape == (B, S, num_classes + 1)
    assert jnp.allclose(po1, ref1, atol=1e-4, rtol=1e-4)
    assert jnp.allclose(po2, ref2, atol=1e-4, rtol=1e-4)

    # Ragged-tail test: S not divisible by tile_s (boundary block masking).
    S2 = 20
    x_b2 = jax.random.normal(jax.random.PRNGKey(1), (B, S2, H), jnp.float32)
    k1b = jax.random.randint(jax.random.PRNGKey(2), (B,), 0, S2, jnp.int32)
    k2b = jax.random.randint(jax.random.PRNGKey(3), (B,), 0, S2, jnp.int32)
    q1, q2 = object_model_forward(x_b2, k1b, k2b, params, tile_s=8)
    jax.block_until_ready((q1, q2))
    r1, r2 = _reference_forward(x_b2, k1b, k2b, params)
    assert jnp.allclose(q1, r1, atol=1e-4, rtol=1e-4)
    assert jnp.allclose(q2, r2, atol=1e-4, rtol=1e-4)

    print("KERNEL_OK")
</pallas_src>

<mosaic_0001>
module attributes {stable_mosaic.version = 11 : i64} {
  func.func @_object_model_kernel(%arg0: i32, %arg1: i32, %arg2: memref<1x8x32xf32, #tpu.memory_space<vmem>>, %arg3: memref<1x1x16xf32, #tpu.memory_space<vmem>>, %arg4: memref<32x16xf32, #tpu.memory_space<vmem>>, %arg5: memref<1x8x16xf32, #tpu.memory_space<vmem>>) attributes {dimension_semantics = [#tpu.dimension_semantics<parallel>, #tpu.dimension_semantics<parallel>], iteration_bounds = array<i64: 2, 2>, scalar_prefetch = 0 : i64, scratch_operands = 0 : i64, tpu.core_type = #tpu.core_type<tc>, window_params = [{transform_indices = @transform_0, window_bounds = array<i64: 1, 8, 32>}, {transform_indices = @transform_1, window_bounds = array<i64: 1, 1, 16>}, {pipeline_mode = #tpu.pipeline_mode<synchronous>, transform_indices = @transform_2, window_bounds = array<i64: 32, 16>}, {transform_indices = @transform_3, window_bounds = array<i64: 1, 8, 16>}]} {
    %c0 = arith.constant 0 : index
    %c0_0 = arith.constant 0 : index
    %c0_1 = arith.constant 0 : index
    %0 = vector.load %arg2[%c0, %c0_0, %c0_1] : memref<1x8x32xf32, #tpu.memory_space<vmem>>, vector<1x8x32xf32>
    %1 = vector.shape_cast %0 : vector<1x8x32xf32> to vector<8x32xf32>
    %c0_2 = arith.constant 0 : index
    %c0_3 = arith.constant 0 : index
    %2 = vector.load %arg4[%c0_2, %c0_3] : memref<32x16xf32, #tpu.memory_space<vmem>>, vector<32x16xf32>
    %cst = arith.constant dense<0.000000e+00> : vector<8x16xf32>
    %3 = tpu.matmul %1, %2, %cst {dimension_numbers = #tpu.dot_dimension_numbers<[1], [0], [0], [1], [0, 0, 1, 1], [], []>} : vector<8x32xf32>, vector<32x16xf32>, vector<8x16xf32> -> vector<8x16xf32>
    %c0_4 = arith.constant 0 : index
    %c0_5 = arith.constant 0 : index
    %c0_6 = arith.constant 0 : index
    %4 = vector.load %arg3[%c0_4, %c0_5, %c0_6] : memref<1x1x16xf32, #tpu.memory_space<vmem>>, vector<1x1x16xf32>
    %5 = vector.shape_cast %4 : vector<1x1x16xf32> to vector<1x16xf32>
    %6 = vector.broadcast %5 : vector<1x16xf32> to vector<8x16xf32>
    %7 = arith.addf %3, %6 : vector<8x16xf32>
    %c0_7 = arith.constant 0 : index
    %c0_8 = arith.constant 0 : index
    %c0_9 = arith.constant 0 : index
    %8 = vector.load %arg5[%c0_7, %c0_8, %c0_9] : memref<1x8x16xf32, #tpu.memory_space<vmem>>, vector<1x8x16xf32>
    %9 = vector.shape_cast %8 : vector<1x8x16xf32> to vector<8x16xf32>
    %10 = vector.shape_cast %7 : vector<8x16xf32> to vector<1x8x16xf32>
    tpu.vector_store %arg5[%c0_7, %c0_8, %c0_9], %10 {strides = array<i32>} : memref<1x8x16xf32, #tpu.memory_space<vmem>>, vector<1x8x16xf32>,
    return
  }
  func.func @transform_0(%arg0: i32, %arg1: i32) -> (i32, i32, i32) {
    %c0_i32 = arith.constant 0 : i32
    %c0_i32_0 = arith.constant 0 : i32
    return %arg0, %arg1, %c0_i32 : i32, i32, i32
  }
  func.func @transform_1(%arg0: i32, %arg1: i32) -> (i32, i32, i32) {
    %c0_i32 = arith.constant 0 : i32
    %c0_i32_0 = arith.constant 0 : i32
    %c0_i32_1 = arith.constant 0 : i32
    return %arg0, %c0_i32, %c0_i32_0 : i32, i32, i32
  }
  func.func @transform_2(%arg0: i32, %arg1: i32) -> (i32, i32) {
    %c0_i32 = arith.constant 0 : i32
    %c0_i32_0 = arith.constant 0 : i32
    %c0_i32_1 = arith.constant 0 : i32
    return %c0_i32, %c0_i32_0 : i32, i32
  }
  func.func @transform_3(%arg0: i32, %arg1: i32) -> (i32, i32, i32) {
    %c0_i32 = arith.constant 0 : i32
    %c0_i32_0 = arith.constant 0 : i32
    return %arg0, %arg1, %c0_i32 : i32, i32, i32
  }
}

</mosaic_0001>

<bundles_post_ra>
// kernel: tpu_custom_call.1
= control target key start
LH: loop header
LB: loop body
LE: loop exit
PB: predicated region body
PF: predicated region fallthrough
CT: control target
= control target key end

     0   :  { %8 = vsyncpa [#allocation3], 0  ;;  %s765_s0 = inlined_call_operand.vmem [shape: f32[2,16,32], index: 0, kind: input, shape index: {}]   ;;  %s766_s1 = inlined_call_operand.vmem [shape: f32[2,1,16], index: 1, kind: input, shape index: {}]   ;;  %s767_s2 = inlined_call_operand.vmem [shape: f32[32,16], index: 2, kind: input, shape index: {}]   ;;  %s768_s3 = inlined_call_operand.hbm [shape: f32[2,16,16], index: 3, kind: output, shape index: {}]  }
   0x1   :  { %10 = vsyncpa [#allocation3 + $0x1], 0  ;;  %s620_s12 = smov 0   ;;  %s622_s13 = smov 0  }
   0x2   :  { %s624_s14 = smov 0   ;;  %s626_s15 = smov 0  }
   0x3   :  { %s628_s16 = smov 0   ;;  %s630_s17 = smov 0  }
   0x4   :  { %s632_s18 = smov 0   ;;  %s634_s19 = smov 0  }
   0x5 LB: > { %s399_s20 = sadd.s32 4294967295, %s595_s19   ;;  %s400_s21 = sadd.s32 4294967294, %s595_s19   ;;  %s595_s19 = sphi %s634_s19, %s16_s19   ;;  %s591_s18 = sphi %s632_s18, %s780_s18   ;;  %s587_s17 = sphi %s630_s17, %s779_s17   ;;  %s583_s16 = sphi %s628_s16, %s778_s16   ;;  %s579_s15 = sphi %s626_s15, %s777_s15   ;;  %s575_s14 = sphi %s624_s14, %s776_s14   ;;  %s571_s13 = sphi %s622_s13, %s775_s13   ;;  %s567_s12 = sphi %s620_s12, %s774_s12  }
   0x6   : > { %s25_s22 = sadd.s32 1, %s587_s17  ;;  %s28_s23 = sadd.s32 1, %s591_s18 }
   0x7   : > { %p26_p0 = scmp.ge.s32.totalorder %s25_s22, 2  ;;  %p122_p1 = scmp.ne.s32.totalorder %s575_s14, %s571_s13 }
   0x8   : > { %p123_p2 = scmp.eq.s32.totalorder %s399_s20, 3  ;;  %p128_p5 = scmp.ne.s32.totalorder %s571_s13, %s567_s12 }
   0x9   : > { %s782_s22 = smov (%p26_p0, %s25_s22), 0  ;;  %s784_s23 = smov (!%p26_p0, %s28_s23), %s591_s18 }
   0xa   : > { %s108_s24 = ssub.s32 %s587_s17, %s782_s22  ;;  %p671_p3 = por %p123_p2, %p122_p1 }
   0xb   : > { %p30_p4 = scmp.ge.s32.totalorder %s784_s23, 2  ;;  %p129_p6 = scmp.eq.s32.totalorder %s400_s21, 3 }
   0xc   : > { %p403_p7 = scmp.ge.s32.totalorder %s595_s19, 1  ;;  %p167_p9 = scmp.lt.s32.totalorder %s595_s19, 5 }
   0xd   : > { %s786_s23 = smov (%p30_p4, %s784_s23), 0  ;;  %p680_p8 = por %p129_p6, %p128_p5 }
   0xe   : > { %771 = sst [smem:[#allocation5_spill]] %s786_s23  ;;  %s107_s27 = ssub.s32 %s591_s18, %s786_s23 }
   0xf   : > { %s112_s28 = sadd.s32 1, %s575_s14  ;;  %s109_s29 = sor.u32 %s108_s24, %s107_s27 }
  0x10   : > { %p168_p10 = pnand %p403_p7, %p167_p9  ;;  %p110_p11 = scmp.eq.s32.totalorder %s109_s29, 0 }
  0x11   : > { %p197_p12 = scmp.lt.s32.totalorder (!%p168_p10), %s583_s16, 1  ;;  %p199_p13 = scmp.lt.s32.totalorder (!%p168_p10), %s579_s15, 1 }
  0x12   : > { %s689_s30 = scalar_select %p110_p11, %s575_s14, %s112_s28  }
  0x13   : > { %171 = sbr.rel (%p168_p10) target bundleno = 241 (0xf1), region = 32  ;;  %s194_s6 = sand.u32 (!%p168_p10), 1, %s571_s13  }
  0x14   : > { %s404_s7 = sshll.u32 (!%p168_p10), %s194_s6, 3  ;;  %s410_s9 = sshll.u32 (!%p168_p10), %s583_s16, 1 }
  0x15   : > { %s196_s24 = scalar_lea.vmem (!%p168_p10), [#allocation2], %s404_s7 }
  0x18   : > { %v212_v0 = vld [vmem:[%s767_s2 + $0x18] sm:$0xff]  ;;  %v597_v1 = vmov 0.0   ;;  %v211_v2 = vld [vmem:[%s767_s2 + $0x10] sm:$0xff]  ;;  %vm598_vm0 = vmmov 0   ;;  %s198_s8 = scalar_select %p197_p12, %s583_s16, 1  ;;  %v210_v3 = vld [vmem:[%s767_s2 + $0x8] sm:$0xff] }
  0x19   : > { %419 = vmatprep.subr.mxu0 %v597_v1  ;;  %427 = vmatprep.mubr.msk.f32.mxu0 %vm598_vm0, %v597_v1  ;;  %s200_s11 = scalar_select %p199_p13, %s579_s15, 1  ;;  %v209_v4 = vld [vmem:[%s767_s2] sm:$0xff]  ;;  %vm220_vm1 = vcmask 261120   ;;  %vm294_vm2 = vcmask 130048  }
  0x1a   : > { %420 = vmatpush3.msra.mxu0 %v212_v0  ;;  %s405_s20 = sshll.u32 %s198_s8, 1  ;;  %s207_s21 = scalar_lea.vmem %s766_s1, %s198_s8 }
  0x1b   : > { %421 = vmatprep.subr.mxu0 %v597_v1  ;;  %s202_s27 = sadd.s32 %s405_s20, %s200_s11  ;;  %s308_s11 = sadd.s32 %s579_s15, %s410_s9  ;;  %v407_v6 = vld [vmem:[%s207_s21] ss:$0 sm:$0xff] }
  0x1c   : > { %422 = vmatpush3.msra.mxu0 %v211_v2  ;;  %s406_s28 = sshll.u32 %s202_s27, 3  ;;  %s411_s20 = sshll.u32 %s308_s11, 7 }
  0x1d   : > { %423 = vmatprep.subr.mxu0 %v597_v1  ;;  %s204_s5 = scalar_lea.vmem %s765_s0, %s406_s28  ;;  %s312_s27 = sshll.u32 %s196_s24, 4  ;;  %s313_s27 = int_to_ptr.vmem [resolvable:$true] %s312_s27 }
  0x1e   : > { %424 = vmatpush3.msra.mxu0 %v210_v3  ;;  %v208_v5 = vld [vmem:[%s204_s5] sm:$0xff]  ;;  %s719_s4 = scalar_lea.hbm %s768_s3, %s411_s20  ;;  %s297_s16 = scalar_lea.sflag [#allocation3], %s194_s6 }
  0x1f   : > { %425 = vmatprep.subr.mxu0 %v597_v1  ;;  %s503_s23 = scalar_lea.vmem %s313_s27, 128  ;;  %s599_s15 = smov [#allocation2]  }
  0x20   : > { %426 = vmatpush3.msra.mxu0 %v209_v4  ;;  %p504_p0 = scmp.ne.s32.totalorder %s313_s27, %s503_s23  ;;  %s507_s8 = sshll.u32 %s599_s15, 4  ;;  %s508_s8 = int_to_ptr.vmem [resolvable:$false] %s507_s8 }
  0x21   : > { %428 = vmatmul.mubr.msk.f32.vlgmr.msra.gmra.mxu0 %vm220_vm1, %v208_v5  ;;  %s509_s5 = scalar_lea.vmem %s508_s8, 256  ;;  %p510_p4 = scmp.lt.s32.totalorder %s313_s27, %s508_s8 }
  0x22   : > { %p505_p1 = pnand %p504_p0, %p671_p3  ;;  %p511_p5 = scmp.lt.s32.totalorder %s509_s5, %s503_s23 }
  0x24   : > { %p506_p2 = pneg %p505_p1  ;;  %p512_p6 = por %p511_p5, %p510_p4 }
  0x26   : > { %p513_p7 = pnand %p512_p6, %p506_p2 }
  0xe1   : > { %v290_v7 = vpop.f32.mrf.mxu0 }
  0xe2   : > { %v291_v8 = vadd.f32 %v407_v6, %v290_v7 }
  0xe3   : > { %v429_v9 = vpop.f32.mrf.mxu0 }
  0xe4   : > { %295 = vst.msk [vmem:[%s196_s24] sm:$0xff] %vm294_vm2, %v291_v8 }
  0xe5   : > { %516 = shalt.err (!%p513_p7)
}
  0xe6   : > { %s517_s7 = scalar_lea.hbm %s719_s4, 128  ;;  %s521_s10 = scalar_lea.hbm %s768_s3, 512 }
  0xe7   : > { %p518_p9 = scmp.ne.s32.totalorder %s719_s4, %s517_s7  ;;  %p522_p12 = scmp.lt.s32.totalorder %s719_s4, %s768_s3 }
  0xe8   : > { %p523_p13 = scmp.lt.s32.totalorder %s521_s10, %s517_s7 }
  0xe9   : > { %p519_p10 = pnand %p518_p9, %p671_p3 }
  0xea   : > { %p524_p0 = por %p523_p13, %p522_p12 }
  0xeb   : > { %p520_p11 = pneg %p519_p10 }
  0xed   : > { %p525_p1 = pnand %p524_p0, %p520_p11 }
  0xef   : > { %528 = shalt.err (!%p525_p1)
}
  0xf0   : > { %430 = dma.vmem_to_hbm [thread:$0]  (%p671_p3), %s313_s27, 128, %s719_s4, %s297_s16  }
  0xf1 PF: > { %p436_p2 = scmp.ge.s32.totalorder %s595_s19, 2  ;;  %s324_s20 = sand.u32 1, %s567_s12  }
  0xf2   : > { %s325_s24 = scalar_lea.sflag [#allocation3], %s324_s20 }
  0xf3   : > { %p433_p4 = pnand %p436_p2, %p680_p8 }
  0xf5   : > { %p434_p5 = pneg %p433_p4 }
  0xf7   : > { %562 = dma.done.wait (%p434_p5), %s325_s24, 128  }
  0xf8   : > { %564 = vsyncadd (%p434_p5), %s325_s24, 4294967168  ;;  %s16_s19 = sadd.s32 1, %s595_s19   ;;  %s773_s25 = sld [smem:[#allocation5_spill]] }
  0xf9   : > { %p13_p6 = scmp.ge.s32.totalorder %s16_s19, 6   ;;  %s774_s12 = smov %s571_s13 }
  0xfa   : > { %s775_s13 = smov %s575_s14  ;;  %s776_s14 = smov %s689_s30 }
  0xfb   : > { %s777_s15 = smov %s587_s17  ;;  %s778_s16 = smov %s591_s18 }
  0xfc   : > { %s779_s17 = smov %s782_s22  ;;  %15 = sbr.rel (!%p13_p6) target bundleno = 5 (0x5), region = 70 }
  0xfe   : > { %s780_s18 = smov %s773_s25 }
 0x101   :  { %330 = vsyncpa [#allocation3], 1 }
 0x102   :  { %332 = vsyncpa [#allocation3 + $0x1], 1 }

</bundles_post_ra>
